<compile_context>
chip_gen: v7x
topology: tpu7x:2x2x1
jax: 0.10.0
libtpu: 0.0.40
codegen_flags: <defaults>
</compile_context>

<pallas_src>
import jax
import jax.numpy as jnp
from jax import lax
from jax.experimental import pallas as pl
from jax.experimental.pallas import tpu as pltpu


# ----------------------------------------------------------------------------
# Tiling helper
# ----------------------------------------------------------------------------

def _choose_tile(m, cap=4096):
    """Largest lane-dense tile (multiple of 128) that divides m, capped; else m."""
    if m <= cap:
        return m
    for t in range(cap - cap % 128, 127, -128):
        if m % t == 0:
            return t
    return m


# ----------------------------------------------------------------------------
# Pallas kernels
# ----------------------------------------------------------------------------

def _pointwise_kernel(x_ref, w_ref, b_ref, o_ref):
    # (Cout, Cin) @ (Cin, TM) + (Cout, 1)
    o_ref[...] = (
        jnp.dot(w_ref[...], x_ref[...], preferred_element_type=jnp.float32)
        + b_ref[...]
    )


def pointwise_conv(x, w, b):
    """1x1 conv. x: (N, Cin, M), w: (Cout, Cin), b: (Cout, 1) -> (N, Cout, M)."""
    N, Cin, M = x.shape
    Cout = w.shape[0]
    tm = _choose_tile(M)
    return pl.pallas_call(
        _pointwise_kernel,
        out_shape=jax.ShapeDtypeStruct((N, Cout, M), jnp.float32),
        grid=(N, M // tm),
        in_specs=[
            pl.BlockSpec((None, Cin, tm), lambda n, m: (n, 0, m)),
            pl.BlockSpec((Cout, Cin), lambda n, m: (0, 0)),
            pl.BlockSpec((Cout, 1), lambda n, m: (0, 0)),
        ],
        out_specs=pl.BlockSpec((None, Cout, tm), lambda n, m: (n, 0, m)),
        compiler_params=pltpu.CompilerParams(
            dimension_semantics=("parallel", "parallel")),
    )(x, w, b)


def _upsample_kernel(xl_ref, th_ref, twt_ref, o_ref):
    # separable bilinear: (H, Hl) @ [(Hl, Wl) @ (Wl, W)]
    tmp = jnp.dot(xl_ref[...], twt_ref[...], preferred_element_type=jnp.float32)
    o_ref[...] = jnp.dot(th_ref[...], tmp, preferred_element_type=jnp.float32)


def bilinear_upsample(xl, th, twt):
    """xl: (N, C, Hl, Wl), th: (H, Hl), twt: (Wl, W) -> (N, C, H, W)."""
    N, C, Hl, Wl = xl.shape
    H, W = th.shape[0], twt.shape[1]
    return pl.pallas_call(
        _upsample_kernel,
        out_shape=jax.ShapeDtypeStruct((N, C, H, W), jnp.float32),
        grid=(N, C),
        in_specs=[
            pl.BlockSpec((None, None, Hl, Wl), lambda n, c: (n, c, 0, 0)),
            pl.BlockSpec((H, Hl), lambda n, c: (0, 0)),
            pl.BlockSpec((Wl, W), lambda n, c: (0, 0)),
        ],
        out_specs=pl.BlockSpec((None, None, H, W), lambda n, c: (n, c, 0, 0)),
        compiler_params=pltpu.CompilerParams(
            dimension_semantics=("parallel", "parallel")),
    )(xl, th, twt)


def _pass_a_kernel(x_ref, xl_ref, xp_ref,
                   wsk_ref, bsk_ref, w3_ref, b3_ref, wt_ref, bt_ref,
                   y_ref, sum_ref, ssq_ref):
    # skips(x): 1x1 conv
    xs = jnp.dot(wsk_ref[...], x_ref[...],
                 preferred_element_type=jnp.float32) + bsk_ref[...]
    # skips_3(x_high): 3x3 conv as fused im2col matmul
    xh = jnp.dot(w3_ref[...], xp_ref[...],
                 preferred_element_type=jnp.float32) + b3_ref[...]
    # Bag (the 4 channel-chunks line up 1:1 -> plain elementwise over channels)
    ea = 1.0 / (1.0 + jnp.exp(-xs))
    y0 = ea * xl_ref[...] + (1.0 - ea) * xh
    # tail_conv + residual with x_skip (= xs)
    y = jnp.dot(wt_ref[...], y0,
                preferred_element_type=jnp.float32) + bt_ref[...] + xs
    y_ref[...] = y

    # per-sample BatchNorm statistics accumulated across the M tiles
    @pl.when(pl.program_id(1) == 0)
    def _():
        sum_ref[...] = jnp.zeros_like(sum_ref)
        ssq_ref[...] = jnp.zeros_like(ssq_ref)
    sum_ref[...] += jnp.sum(y, axis=1, keepdims=True)
    ssq_ref[...] += jnp.sum(y * y, axis=1, keepdims=True)


def dasi_pass_a(x, xl_up, patches, wsk, bsk, w3, b3, wt, bt):
    """x: (N,Ci,M), xl_up: (N,Co,M), patches: (N,9*Ci/2,M).

    Returns y: (N,Co,M) plus per-sample channel sums / sums-of-squares."""
    N, Ci, M = x.shape
    Co = wsk.shape[0]
    K9 = patches.shape[1]
    tm = _choose_tile(M)
    return pl.pallas_call(
        _pass_a_kernel,
        out_shape=(jax.ShapeDtypeStruct((N, Co, M), jnp.float32),
                   jax.ShapeDtypeStruct((N, Co, 1), jnp.float32),
                   jax.ShapeDtypeStruct((N, Co, 1), jnp.float32)),
        grid=(N, M // tm),
        in_specs=[
            pl.BlockSpec((None, Ci, tm), lambda n, m: (n, 0, m)),
            pl.BlockSpec((None, Co, tm), lambda n, m: (n, 0, m)),
            pl.BlockSpec((None, K9, tm), lambda n, m: (n, 0, m)),
            pl.BlockSpec((Co, Ci), lambda n, m: (0, 0)),
            pl.BlockSpec((Co, 1), lambda n, m: (0, 0)),
            pl.BlockSpec((Co, K9), lambda n, m: (0, 0)),
            pl.BlockSpec((Co, 1), lambda n, m: (0, 0)),
            pl.BlockSpec((Co, Co), lambda n, m: (0, 0)),
            pl.BlockSpec((Co, 1), lambda n, m: (0, 0)),
        ],
        out_specs=(pl.BlockSpec((None, Co, tm), lambda n, m: (n, 0, m)),
                   pl.BlockSpec((None, Co, 1), lambda n, m: (n, 0, 0)),
                   pl.BlockSpec((None, Co, 1), lambda n, m: (n, 0, 0))),
        compiler_params=pltpu.CompilerParams(
            dimension_semantics=("parallel", "arbitrary")),
    )(x, xl_up, patches, wsk, bsk, w3, b3, wt, bt)


def _pass_b_kernel(y_ref, sc_ref, sh_ref, wfc_ref, o_ref):
    yn = y_ref[...] * sc_ref[...] + sh_ref[...]          # BN affine
    z = jnp.dot(wfc_ref[...], yn, preferred_element_type=jnp.float32)  # fc
    o_ref[...] = jnp.maximum(z, 0.0)                     # ReLU


def dasi_pass_b(y, scale, shift, wfc):
    """y: (N,Co,M), scale/shift: (Co,1), wfc: (Ci,Co) -> (N,Ci,M)."""
    N, Co, M = y.shape
    Ci = wfc.shape[0]
    tm = _choose_tile(M)
    return pl.pallas_call(
        _pass_b_kernel,
        out_shape=jax.ShapeDtypeStruct((N, Ci, M), jnp.float32),
        grid=(N, M // tm),
        in_specs=[
            pl.BlockSpec((None, Co, tm), lambda n, m: (n, 0, m)),
            pl.BlockSpec((Co, 1), lambda n, m: (0, 0)),
            pl.BlockSpec((Co, 1), lambda n, m: (0, 0)),
            pl.BlockSpec((Ci, Co), lambda n, m: (0, 0)),
        ],
        out_specs=pl.BlockSpec((None, Ci, tm), lambda n, m: (n, 0, m)),
        compiler_params=pltpu.CompilerParams(
            dimension_semantics=("parallel", "parallel")),
    )(y, scale, shift, wfc)


# ----------------------------------------------------------------------------
# Plain-JAX glue (layout only, all inside jit)
# ----------------------------------------------------------------------------

def interp_matrix(s_out, s_in):
    """1-D bilinear interpolation matrix, align_corners=True."""
    ratio = (s_in - 1) / (s_out - 1) if s_out > 1 else 0.0
    coords = jnp.arange(s_out, dtype=jnp.float32) * ratio
    i0 = jnp.clip(jnp.floor(coords).astype(jnp.int32), 0, s_in - 1)
    i1 = jnp.clip(i0 + 1, 0, s_in - 1)
    w1 = coords - i0.astype(jnp.float32)
    w0 = 1.0 - w1
    a = jnp.zeros((s_out, s_in), jnp.float32)
    rows = jnp.arange(s_out)
    a = a.at[rows, i0].add(w0)
    a = a.at[rows, i1].add(w1)
    return a


def _skips3_patches(x_high, H, W):
    """skips_3 (k=3, s=2, d=2, p=2) == 3x3/s1/p1 conv on the even-subsampled
    x_high.  Returns the 9-tap im2col in (N, 9*Ch, H*W) layout (tap-major,
    channel-minor), lane-dense."""
    xe = x_high[:, :, ::2, ::2]                               # (N, Ch, H, W)
    xe = jnp.pad(xe, ((0, 0), (0, 0), (1, 1), (1, 1)))
    taps = [xe[:, :, kh:kh + H, kw:kw + W]
            for kh in range(3) for kw in range(3)]
    N, Ch = x_high.shape[0], x_high.shape[1]
    return jnp.concatenate(taps, axis=1).reshape(N, 9 * Ch, H * W)


# ----------------------------------------------------------------------------
# Forward pass
# ----------------------------------------------------------------------------

@jax.jit
def dasi_forward(x_nchw, xlow_nchw, xhigh_nchw, params):
    x = x_nchw.astype(jnp.float32)
    xlow = xlow_nchw.astype(jnp.float32)
    xhigh = xhigh_nchw.astype(jnp.float32)

    N, Ci, H, W = x.shape
    Co = params["w_skips"].shape[0]
    Ch = Ci // 2
    M = H * W
    Hl, Wl = xlow.shape[2], xlow.shape[3]
    Ml = Hl * Wl

    # skips_2: 1x1 conv at low resolution (Pallas)
    xl_feat = pointwise_conv(xlow.reshape(N, 2 * Ci, Ml),
                             params["w_skips2"], params["b_skips2"])
    xl_feat = xl_feat.reshape(N, Co, Hl, Wl)

    # bilinear upsample, align_corners=True, separable (Pallas)
    th = interp_matrix(H, Hl)
    twt = interp_matrix(W, Wl).T
    xl_up = bilinear_upsample(xl_feat, th, twt).reshape(N, Co, M)

    # skips_3 im2col (even-subsample equivalence), matmul fused into pass A
    patches = _skips3_patches(xhigh, H, W)                    # (N, 9*Ch, M)
    w3_flat = jnp.transpose(params["w_skips3"], (0, 2, 3, 1)).reshape(Co, 9 * Ch)

    # pass A: skips(x), skips_3 matmul, Bag, tail_conv, +x_skip, BN stats
    y, ssum, ssq = dasi_pass_a(x.reshape(N, Ci, M), xl_up, patches,
                               params["w_skips"], params["b_skips"],
                               w3_flat, params["b_skips3"],
                               params["w_tail"], params["b_tail"])

    # BatchNorm2d (training mode, batch statistics, biased variance)
    cnt = jnp.float32(N * M)
    mean = ssum[:, :, 0].sum(axis=0) / cnt                    # (Co,)
    var = jnp.maximum(ssq[:, :, 0].sum(axis=0) / cnt - mean * mean, 0.0)
    scale = params["bn_gamma"] * lax.rsqrt(var + 1e-5)
    shift = params["bn_beta"] - mean * scale

    # pass B: normalize, fc, ReLU
    out = dasi_pass_b(y, scale.reshape(Co, 1), shift.reshape(Co, 1),
                      params["w_fc"])
    return out.reshape(N, Ci, H, W)


# ----------------------------------------------------------------------------
# Pure-JAX reference (independent math, incl. the real strided/dilated conv)
# ----------------------------------------------------------------------------

@jax.jit
def dasi_reference(x_nchw, xlow_nchw, xhigh_nchw, params):
    x = x_nchw.astype(jnp.float32)
    xlow = xlow_nchw.astype(jnp.float32)
    xhigh = xhigh_nchw.astype(jnp.float32)
    N, Ci, H, W = x.shape

    def conv1x1(t, w, b=None):
        r = jnp.einsum('oc,nchw->nohw', w, t)
        return r if b is None else r + b.reshape(1, -1, 1, 1)

    xh = lax.conv_general_dilated(
        xhigh, params["w_skips3"], window_strides=(2, 2),
        padding=((2, 2), (2, 2)), rhs_dilation=(2, 2),
        dimension_numbers=('NCHW', 'OIHW', 'NCHW'),
    ) + params["b_skips3"].reshape(1, -1, 1, 1)

    xl = conv1x1(xlow, params["w_skips2"], params["b_skips2"])
    Hl, Wl = xlow.shape[2], xlow.shape[3]
    Th, Tw = interp_matrix(H, Hl), interp_matrix(W, Wl)
    xl = jnp.einsum('nchb,wb->nchw', xl, Tw)
    xl = jnp.einsum('hk,nckw->nchw', Th, xl)

    xs = conv1x1(x, params["w_skips"], params["b_skips"])
    ea = jax.nn.sigmoid(xs)
    y = ea * xl + (1.0 - ea) * xh
    y = conv1x1(y, params["w_tail"], params["b_tail"]) + xs

    mean = y.mean(axis=(0, 2, 3), keepdims=True)
    var = ((y - mean) ** 2).mean(axis=(0, 2, 3), keepdims=True)
    y = (y - mean) * lax.rsqrt(var + 1e-5) * params["bn_gamma"].reshape(1, -1, 1, 1) \
        + params["bn_beta"].reshape(1, -1, 1, 1)

    z = conv1x1(y, params["w_fc"])
    return jnp.maximum(z, 0.0)


# ----------------------------------------------------------------------------
# Parameters + demo
# ----------------------------------------------------------------------------

def make_params(key, in_features, out_features):
    ci, co, ch = in_features, out_features, in_features // 2
    ks = jax.random.split(key, 9)
    s = 0.1
    return {
        "w_skips":  s * jax.random.normal(ks[0], (co, ci), jnp.float32),
        "b_skips":  s * jax.random.normal(ks[1], (co, 1), jnp.float32),
        "w_skips2": s * jax.random.normal(ks[2], (co, 2 * ci), jnp.float32),
        "b_skips2": s * jax.random.normal(ks[3], (co, 1), jnp.float32),
        "w_skips3": s * jax.random.normal(ks[4], (co, ch, 3, 3), jnp.float32),
        "b_skips3": s * jax.random.normal(ks[5], (co, 1), jnp.float32),
        "w_tail":   s * jax.random.normal(ks[6], (co, co), jnp.float32),
        "b_tail":   s * jax.random.normal(ks[7], (co, 1), jnp.float32),
        "bn_gamma": jnp.ones((co,), jnp.float32),
        "bn_beta":  jnp.zeros((co,), jnp.float32),
        "w_fc":     s * jax.random.normal(ks[8], (ci, co), jnp.float32),
    }


if __name__ == "__main__":
    in_features, out_features = 8, 8
    N, H, W = 2, 16, 16

    key = jax.random.PRNGKey(0)
    kx, kl, kh, kp = jax.random.split(key, 4)

    # PyTorch NCHW-convention inputs (DASI "both present" / Bag branch):
    x = jax.random.normal(kx, (N, in_features, H, W), jnp.float32)
    x_low = jax.random.normal(kl, (N, 2 * in_features, H // 2, W // 2), jnp.float32)
    x_high = jax.random.normal(kh, (N, in_features // 2, 2 * H, 2 * W), jnp.float32)

    params = make_params(kp, in_features, out_features)

    out = jax.block_until_ready(dasi_forward(x, x_low, x_high, params))
    ref = jax.block_until_ready(dasi_reference(x, x_low, x_high, params))

    assert out.shape == (N, in_features, H, W)
    max_err = float(jnp.max(jnp.abs(out - ref)))
    assert jnp.allclose(out, ref, atol=2e-4, rtol=2e-4), max_err

    print("KERNEL_OK")
</pallas_src>

<mosaic_0001>
module attributes {stable_mosaic.version = 11 : i64} {
  func.func private @main(%arg0: i32) attributes {dimension_semantics = [#tpu.dimension_semantics<core_parallel>], iteration_bounds = array<i64: 2>, tpu.core_type = #tpu.core_type<sc_scalar_subcore>, window_params = []} {
    return
  }
}

module attributes {stable_mosaic.version = 11 : i64} {
  func.func private @main(%arg0: i32) attributes {dimension_semantics = [#tpu.dimension_semantics<core_parallel>], iteration_bounds = array<i64: 2>, tpu.core_type = #tpu.core_type<sc_scalar_subcore>, window_params = []} {
    return
  }
}

module attributes {stable_mosaic.version = 11 : i64} {
  func.func @_pointwise_kernel(%arg0: i32, %arg1: i32, %arg2: memref<1x16x64xf32, #tpu.memory_space<vmem>>, %arg3: memref<8x16xf32, #tpu.memory_space<vmem>>, %arg4: memref<8x1xf32, #tpu.memory_space<vmem>>, %arg5: memref<1x8x64xf32, #tpu.memory_space<vmem>>) attributes {dimension_semantics = [#tpu.dimension_semantics<parallel>, #tpu.dimension_semantics<parallel>], iteration_bounds = array<i64: 2, 1>, scalar_prefetch = 0 : i64, scratch_operands = 0 : i64, tpu.core_type = #tpu.core_type<tc>, window_params = [{transform_indices = @transform_0, window_bounds = array<i64: 1, 16, 64>}, {pipeline_mode = #tpu.pipeline_mode<synchronous>, transform_indices = @transform_1, window_bounds = array<i64: 8, 16>}, {pipeline_mode = #tpu.pipeline_mode<synchronous>, transform_indices = @transform_2, window_bounds = array<i64: 8, 1>}, {transform_indices = @transform_3, window_bounds = array<i64: 1, 8, 64>}]} {
    %c0 = arith.constant 0 : index
    %c0_0 = arith.constant 0 : index
    %0 = vector.load %arg3[%c0, %c0_0] : memref<8x16xf32, #tpu.memory_space<vmem>>, vector<8x16xf32>
    %c0_1 = arith.constant 0 : index
    %c0_2 = arith.constant 0 : index
    %c0_3 = arith.constant 0 : index
    %1 = vector.load %arg2[%c0_1, %c0_2, %c0_3] : memref<1x16x64xf32, #tpu.memory_space<vmem>>, vector<1x16x64xf32>
    %2 = vector.shape_cast %1 : vector<1x16x64xf32> to vector<16x64xf32>
    %cst = arith.constant dense<0.000000e+00> : vector<8x64xf32>
    %3 = tpu.matmul %0, %2, %cst {dimension_numbers = #tpu.dot_dimension_numbers<[1], [0], [0], [1], [0, 0, 1, 1], [], []>} : vector<8x16xf32>, vector<16x64xf32>, vector<8x64xf32> -> vector<8x64xf32>
    %c0_4 = arith.constant 0 : index
    %c0_5 = arith.constant 0 : index
    %4 = vector.load %arg4[%c0_4, %c0_5] : memref<8x1xf32, #tpu.memory_space<vmem>>, vector<8x1xf32>
    %5 = vector.broadcast %4 : vector<8x1xf32> to vector<8x64xf32>
    %6 = arith.addf %3, %5 : vector<8x64xf32>
    %c0_6 = arith.constant 0 : index
    %c0_7 = arith.constant 0 : index
    %c0_8 = arith.constant 0 : index
    %7 = vector.load %arg5[%c0_6, %c0_7, %c0_8] : memref<1x8x64xf32, #tpu.memory_space<vmem>>, vector<1x8x64xf32>
    %8 = vector.shape_cast %7 : vector<1x8x64xf32> to vector<8x64xf32>
    %9 = vector.shape_cast %6 : vector<8x64xf32> to vector<1x8x64xf32>
    tpu.vector_store %arg5[%c0_6, %c0_7, %c0_8], %9 {strides = array<i32>} : memref<1x8x64xf32, #tpu.memory_space<vmem>>, vector<1x8x64xf32>,
    return
  }
  func.func @transform_0(%arg0: i32, %arg1: i32) -> (i32, i32, i32) {
    %c0_i32 = arith.constant 0 : i32
    %c0_i32_0 = arith.constant 0 : i32
    return %arg0, %c0_i32, %arg1 : i32, i32, i32
  }
  func.func @transform_1(%arg0: i32, %arg1: i32) -> (i32, i32) {
    %c0_i32 = arith.constant 0 : i32
    %c0_i32_0 = arith.constant 0 : i32
    %c0_i32_1 = arith.constant 0 : i32
    return %c0_i32, %c0_i32_0 : i32, i32
  }
  func.func @transform_2(%arg0: i32, %arg1: i32) -> (i32, i32) {
    %c0_i32 = arith.constant 0 : i32
    %c0_i32_0 = arith.constant 0 : i32
    %c0_i32_1 = arith.constant 0 : i32
    return %c0_i32, %c0_i32_0 : i32, i32
  }
  func.func @transform_3(%arg0: i32, %arg1: i32) -> (i32, i32, i32) {
    %c0_i32 = arith.constant 0 : i32
    %c0_i32_0 = arith.constant 0 : i32
    return %arg0, %c0_i32, %arg1 : i32, i32, i32
  }
}

module attributes {stable_mosaic.version = 11 : i64} {
  func.func @_upsample_kernel(%arg0: i32, %arg1: i32, %arg2: memref<1x1x8x8xf32, #tpu.memory_space<vmem>>, %arg3: memref<16x8xf32, #tpu.memory_space<vmem>>, %arg4: memref<8x16xf32, #tpu.memory_space<vmem>>, %arg5: memref<1x1x16x16xf32, #tpu.memory_space<vmem>>) attributes {dimension_semantics = [#tpu.dimension_semantics<parallel>, #tpu.dimension_semantics<parallel>], iteration_bounds = array<i64: 2, 8>, scalar_prefetch = 0 : i64, scratch_operands = 0 : i64, tpu.core_type = #tpu.core_type<tc>, window_params = [{transform_indices = @transform_0, window_bounds = array<i64: 1, 1, 8, 8>}, {pipeline_mode = #tpu.pipeline_mode<synchronous>, transform_indices = @transform_1, window_bounds = array<i64: 16, 8>}, {pipeline_mode = #tpu.pipeline_mode<synchronous>, transform_indices = @transform_2, window_bounds = array<i64: 8, 16>}, {transform_indices = @transform_3, window_bounds = array<i64: 1, 1, 16, 16>}]} {
    %c0 = arith.constant 0 : index
    %c0_0 = arith.constant 0 : index
    %c0_1 = arith.constant 0 : index
    %c0_2 = arith.constant 0 : index
    %0 = vector.load %arg2[%c0, %c0_0, %c0_1, %c0_2] : memref<1x1x8x8xf32, #tpu.memory_space<vmem>>, vector<1x1x8x8xf32>
    %1 = vector.shape_cast %0 : vector<1x1x8x8xf32> to vector<8x8xf32>
    %c0_3 = arith.constant 0 : index
    %c0_4 = arith.constant 0 : index
    %2 = vector.load %arg4[%c0_3, %c0_4] : memref<8x16xf32, #tpu.memory_space<vmem>>, vector<8x16xf32>
    %cst = arith.constant dense<0.000000e+00> : vector<8x16xf32>
    %3 = tpu.matmul %1, %2, %cst {dimension_numbers = #tpu.dot_dimension_numbers<[1], [0], [0], [1], [0, 0, 1, 1], [], []>} : vector<8x8xf32>, vector<8x16xf32>, vector<8x16xf32> -> vector<8x16xf32>
    %c0_5 = arith.constant 0 : index
    %c0_6 = arith.constant 0 : index
    %4 = vector.load %arg3[%c0_5, %c0_6] : memref<16x8xf32, #tpu.memory_space<vmem>>, vector<16x8xf32>
    %cst_7 = arith.constant dense<0.000000e+00> : vector<16x16xf32>
    %5 = tpu.matmul %4, %3, %cst_7 {dimension_numbers = #tpu.dot_dimension_numbers<[1], [0], [0], [1], [0, 0, 1, 1], [], []>} : vector<16x8xf32>, vector<8x16xf32>, vector<16x16xf32> -> vector<16x16xf32>
    %c0_8 = arith.constant 0 : index
    %c0_9 = arith.constant 0 : index
    %c0_10 = arith.constant 0 : index
    %c0_11 = arith.constant 0 : index
    %6 = vector.load %arg5[%c0_8, %c0_9, %c0_10, %c0_11] : memref<1x1x16x16xf32, #tpu.memory_space<vmem>>, vector<1x1x16x16xf32>
    %7 = vector.shape_cast %6 : vector<1x1x16x16xf32> to vector<16x16xf32>
    %8 = vector.shape_cast %5 : vector<16x16xf32> to vector<1x1x16x16xf32>
    tpu.vector_store %arg5[%c0_8, %c0_9, %c0_10, %c0_11], %8 {strides = array<i32>} : memref<1x1x16x16xf32, #tpu.memory_space<vmem>>, vector<1x1x16x16xf32>,
    return
  }
  func.func @transform_0(%arg0: i32, %arg1: i32) -> (i32, i32, i32, i32) {
    %c0_i32 = arith.constant 0 : i32
    %c0_i32_0 = arith.constant 0 : i32
    %c0_i32_1 = arith.constant 0 : i32
    return %arg0, %arg1, %c0_i32, %c0_i32_0 : i32, i32, i32, i32
  }
  func.func @transform_1(%arg0: i32, %arg1: i32) -> (i32, i32) {
    %c0_i32 = arith.constant 0 : i32
    %c0_i32_0 = arith.constant 0 : i32
    %c0_i32_1 = arith.constant 0 : i32
    return %c0_i32, %c0_i32_0 : i32, i32
  }
  func.func @transform_2(%arg0: i32, %arg1: i32) -> (i32, i32) {
    %c0_i32 = arith.constant 0 : i32
    %c0_i32_0 = arith.constant 0 : i32
    %c0_i32_1 = arith.constant 0 : i32
    return %c0_i32, %c0_i32_0 : i32, i32
  }
  func.func @transform_3(%arg0: i32, %arg1: i32) -> (i32, i32, i32, i32) {
    %c0_i32 = arith.constant 0 : i32
    %c0_i32_0 = arith.constant 0 : i32
    %c0_i32_1 = arith.constant 0 : i32
    return %arg0, %arg1, %c0_i32, %c0_i32_0 : i32, i32, i32, i32
  }
}

module attributes {stable_mosaic.version = 11 : i64} {
  func.func @_pass_a_kernel(%arg0: i32, %arg1: i32, %arg2: memref<1x8x256xf32, #tpu.memory_space<vmem>>, %arg3: memref<1x8x256xf32, #tpu.memory_space<vmem>>, %arg4: memref<1x36x256xf32, #tpu.memory_space<vmem>>, %arg5: memref<8x8xf32, #tpu.memory_space<vmem>>, %arg6: memref<8x1xf32, #tpu.memory_space<vmem>>, %arg7: memref<8x36xf32, #tpu.memory_space<vmem>>, %arg8: memref<8x1xf32, #tpu.memory_space<vmem>>, %arg9: memref<8x8xf32, #tpu.memory_space<vmem>>, %arg10: memref<8x1xf32, #tpu.memory_space<vmem>>, %arg11: memref<1x8x256xf32, #tpu.memory_space<vmem>>, %arg12: memref<1x8x1xf32, #tpu.memory_space<vmem>>, %arg13: memref<1x8x1xf32, #tpu.memory_space<vmem>>) attributes {dimension_semantics = [#tpu.dimension_semantics<parallel>, #tpu.dimension_semantics<arbitrary>], iteration_bounds = array<i64: 2, 1>, scalar_prefetch = 0 : i64, scratch_operands = 0 : i64, tpu.core_type = #tpu.core_type<tc>, window_params = [{transform_indices = @transform_0, window_bounds = array<i64: 1, 8, 256>}, {transform_indices = @transform_1, window_bounds = array<i64: 1, 8, 256>}, {transform_indices = @transform_2, window_bounds = array<i64: 1, 36, 256>}, {pipeline_mode = #tpu.pipeline_mode<synchronous>, transform_indices = @transform_3, window_bounds = array<i64: 8, 8>}, {pipeline_mode = #tpu.pipeline_mode<synchronous>, transform_indices = @transform_4, window_bounds = array<i64: 8, 1>}, {pipeline_mode = #tpu.pipeline_mode<synchronous>, transform_indices = @transform_5, window_bounds = array<i64: 8, 36>}, {pipeline_mode = #tpu.pipeline_mode<synchronous>, transform_indices = @transform_6, window_bounds = array<i64: 8, 1>}, {pipeline_mode = #tpu.pipeline_mode<synchronous>, transform_indices = @transform_7, window_bounds = array<i64: 8, 8>}, {pipeline_mode = #tpu.pipeline_mode<synchronous>, transform_indices = @transform_8, window_bounds = array<i64: 8, 1>}, {transform_indices = @transform_9, window_bounds = array<i64: 1, 8, 256>}, {transform_indices = @transform_10, window_bounds = array<i64: 1, 8, 1>}, {transform_indices = @transform_11, window_bounds = array<i64: 1, 8, 1>}]} {
    %c0 = arith.constant 0 : index
    %c0_0 = arith.constant 0 : index
    %0 = vector.load %arg5[%c0, %c0_0] : memref<8x8xf32, #tpu.memory_space<vmem>>, vector<8x8xf32>
    %c0_1 = arith.constant 0 : index
    %c0_2 = arith.constant 0 : index
    %c0_3 = arith.constant 0 : index
    %1 = vector.load %arg2[%c0_1, %c0_2, %c0_3] : memref<1x8x256xf32, #tpu.memory_space<vmem>>, vector<1x8x256xf32>
    %2 = vector.shape_cast %1 : vector<1x8x256xf32> to vector<8x256xf32>
    %cst = arith.constant dense<0.000000e+00> : vector<8x256xf32>
    %3 = tpu.matmul %0, %2, %cst {dimension_numbers = #tpu.dot_dimension_numbers<[1], [0], [0], [1], [0, 0, 1, 1], [], []>} : vector<8x8xf32>, vector<8x256xf32>, vector<8x256xf32> -> vector<8x256xf32>
    %c0_4 = arith.constant 0 : index
    %c0_5 = arith.constant 0 : index
    %4 = vector.load %arg6[%c0_4, %c0_5] : memref<8x1xf32, #tpu.memory_space<vmem>>, vector<8x1xf32>
    %5 = vector.broadcast %4 : vector<8x1xf32> to vector<8x256xf32>
    %6 = arith.addf %3, %5 : vector<8x256xf32>
    %c0_6 = arith.constant 0 : index
    %c0_7 = arith.constant 0 : index
    %7 = vector.load %arg7[%c0_6, %c0_7] : memref<8x36xf32, #tpu.memory_space<vmem>>, vector<8x36xf32>
    %c0_8 = arith.constant 0 : index
    %c0_9 = arith.constant 0 : index
    %c0_10 = arith.constant 0 : index
    %8 = vector.load %arg4[%c0_8, %c0_9, %c0_10] : memref<1x36x256xf32, #tpu.memory_space<vmem>>, vector<1x36x256xf32>
    %9 = vector.shape_cast %8 : vector<1x36x256xf32> to vector<36x256xf32>
    %cst_11 = arith.constant dense<0.000000e+00> : vector<8x256xf32>
    %10 = tpu.matmul %7, %9, %cst_11 {dimension_numbers = #tpu.dot_dimension_numbers<[1], [0], [0], [1], [0, 0, 1, 1], [], []>} : vector<8x36xf32>, vector<36x256xf32>, vector<8x256xf32> -> vector<8x256xf32>
    %c0_12 = arith.constant 0 : index
    %c0_13 = arith.constant 0 : index
    %11 = vector.load %arg8[%c0_12, %c0_13] : memref<8x1xf32, #tpu.memory_space<vmem>>, vector<8x1xf32>
    %12 = vector.broadcast %11 : vector<8x1xf32> to vector<8x256xf32>
    %13 = arith.addf %10, %12 : vector<8x256xf32>
    %cst_14 = arith.constant 0.000000e+00 : f32
    %14 = vector.broadcast %cst_14 : f32 to vector<8x256xf32>
    %15 = arith.subf %14, %6 : vector<8x256xf32>
    %16 = math.exp %15 : vector<8x256xf32>
    %cst_15 = arith.constant 1.000000e+00 : f32
    %17 = vector.broadcast %cst_15 : f32 to vector<8x256xf32>
    %18 = arith.addf %17, %16 : vector<8x256xf32>
    %cst_16 = arith.constant 1.000000e+00 : f32
    %19 = vector.broadcast %cst_16 : f32 to vector<8x256xf32>
    %20 = arith.divf %19, %18 : vector<8x256xf32>
    %c0_17 = arith.constant 0 : index
    %c0_18 = arith.constant 0 : index
    %c0_19 = arith.constant 0 : index
    %21 = vector.load %arg3[%c0_17, %c0_18, %c0_19] : memref<1x8x256xf32, #tpu.memory_space<vmem>>, vector<1x8x256xf32>
    %22 = vector.shape_cast %21 : vector<1x8x256xf32> to vector<8x256xf32>
    %23 = arith.mulf %20, %22 : vector<8x256xf32>
    %cst_20 = arith.constant 1.000000e+00 : f32
    %24 = vector.broadcast %cst_20 : f32 to vector<8x256xf32>
    %25 = arith.subf %24, %20 : vector<8x256xf32>
    %26 = arith.mulf %25, %13 : vector<8x256xf32>
    %27 = arith.addf %23, %26 : vector<8x256xf32>
    %c0_21 = arith.constant 0 : index
    %c0_22 = arith.constant 0 : index
    %28 = vector.load %arg9[%c0_21, %c0_22] : memref<8x8xf32, #tpu.memory_space<vmem>>, vector<8x8xf32>
    %cst_23 = arith.constant dense<0.000000e+00> : vector<8x256xf32>
    %29 = tpu.matmul %28, %27, %cst_23 {dimension_numbers = #tpu.dot_dimension_numbers<[1], [0], [0], [1], [0, 0, 1, 1], [], []>} : vector<8x8xf32>, vector<8x256xf32>, vector<8x256xf32> -> vector<8x256xf32>
    %c0_24 = arith.constant 0 : index
    %c0_25 = arith.constant 0 : index
    %30 = vector.load %arg10[%c0_24, %c0_25] : memref<8x1xf32, #tpu.memory_space<vmem>>, vector<8x1xf32>
    %31 = vector.broadcast %30 : vector<8x1xf32> to vector<8x256xf32>
    %32 = arith.addf %29, %31 : vector<8x256xf32>
    %33 = arith.addf %32, %6 : vector<8x256xf32>
    %c0_26 = arith.constant 0 : index
    %c0_27 = arith.constant 0 : index
    %c0_28 = arith.constant 0 : index
    %34 = vector.load %arg11[%c0_26, %c0_27, %c0_28] : memref<1x8x256xf32, #tpu.memory_space<vmem>>, vector<1x8x256xf32>
    %35 = vector.shape_cast %34 : vector<1x8x256xf32> to vector<8x256xf32>
    %36 = vector.shape_cast %33 : vector<8x256xf32> to vector<1x8x256xf32>
    tpu.vector_store %arg11[%c0_26, %c0_27, %c0_28], %36 {strides = array<i32>} : memref<1x8x256xf32, #tpu.memory_space<vmem>>, vector<1x8x256xf32>,
    %c0_i32 = arith.constant 0 : i32
    %37 = arith.cmpi eq, %arg1, %c0_i32 : i32
    %38 = arith.extui %37 : i1 to i32
    %c0_i32_29 = arith.constant 0 : i32
    %39 = arith.cmpi ne, %38, %c0_i32_29 : i32
    scf.if %39 {
      %cst_44 = arith.constant 0.000000e+00 : f32
      %57 = vector.broadcast %cst_44 : f32 to vector<8x1xf32>
      %c0_45 = arith.constant 0 : index
      %c0_46 = arith.constant 0 : index
      %c0_47 = arith.constant 0 : index
      %58 = vector.load %arg12[%c0_45, %c0_46, %c0_47] : memref<1x8x1xf32, #tpu.memory_space<vmem>>, vector<1x8x1xf32>
      %59 = vector.shape_cast %58 : vector<1x8x1xf32> to vector<8x1xf32>
      %60 = vector.shape_cast %57 : vector<8x1xf32> to vector<1x8x1xf32>
      tpu.vector_store %arg12[%c0_45, %c0_46, %c0_47], %60 {strides = array<i32>} : memref<1x8x1xf32, #tpu.memory_space<vmem>>, vector<1x8x1xf32>,
      %cst_48 = arith.constant 0.000000e+00 : f32
      %61 = vector.broadcast %cst_48 : f32 to vector<8x1xf32>
      %c0_49 = arith.constant 0 : index
      %c0_50 = arith.constant 0 : index
      %c0_51 = arith.constant 0 : index
      %62 = vector.load %arg13[%c0_49, %c0_50, %c0_51] : memref<1x8x1xf32, #tpu.memory_space<vmem>>, vector<1x8x1xf32>
      %63 = vector.shape_cast %62 : vector<1x8x1xf32> to vector<8x1xf32>
      %64 = vector.shape_cast %61 : vector<8x1xf32> to vector<1x8x1xf32>
      tpu.vector_store %arg13[%c0_49, %c0_50, %c0_51], %64 {strides = array<i32>} : memref<1x8x1xf32, #tpu.memory_space<vmem>>, vector<1x8x1xf32>,
    } else {
    }
    %c0_30 = arith.constant 0 : index
    %c0_31 = arith.constant 0 : index
    %c0_32 = arith.constant 0 : index
    %40 = vector.load %arg12[%c0_30, %c0_31, %c0_32] : memref<1x8x1xf32, #tpu.memory_space<vmem>>, vector<1x8x1xf32>
    %41 = vector.shape_cast %40 : vector<1x8x1xf32> to vector<8x1xf32>
    %cst_33 = arith.constant dense<0.000000e+00> : vector<8xf32>
    %42 = vector.multi_reduction <add>, %33, %cst_33 [1] : vector<8x256xf32> to vector<8xf32>
    %43 = vector.shape_cast %42 : vector<8xf32> to vector<8x1xf32>
    %44 = arith.addf %41, %43 : vector<8x1xf32>
    %c0_34 = arith.constant 0 : index
    %c0_35 = arith.constant 0 : index
    %c0_36 = arith.constant 0 : index
    %45 = vector.load %arg12[%c0_34, %c0_35, %c0_36] : memref<1x8x1xf32, #tpu.memory_space<vmem>>, vector<1x8x1xf32>
    %46 = vector.shape_cast %45 : vector<1x8x1xf32> to vector<8x1xf32>
    %47 = vector.shape_cast %44 : vector<8x1xf32> to vector<1x8x1xf32>
    tpu.vector_store %arg12[%c0_34, %c0_35, %c0_36], %47 {strides = array<i32>} : memref<1x8x1xf32, #tpu.memory_space<vmem>>, vector<1x8x1xf32>,
    %c0_37 = arith.constant 0 : index
    %c0_38 = arith.constant 0 : index
    %c0_39 = arith.constant 0 : index
    %48 = vector.load %arg13[%c0_37, %c0_38, %c0_39] : memref<1x8x1xf32, #tpu.memory_space<vmem>>, vector<1x8x1xf32>
    %49 = vector.shape_cast %48 : vector<1x8x1xf32> to vector<8x1xf32>
    %50 = arith.mulf %33, %33 : vector<8x256xf32>
    %cst_40 = arith.constant dense<0.000000e+00> : vector<8xf32>
    %51 = vector.multi_reduction <add>, %50, %cst_40 [1] : vector<8x256xf32> to vector<8xf32>
    %52 = vector.shape_cast %51 : vector<8xf32> to vector<8x1xf32>
    %53 = arith.addf %49, %52 : vector<8x1xf32>
    %c0_41 = arith.constant 0 : index
    %c0_42 = arith.constant 0 : index
    %c0_43 = arith.constant 0 : index
    %54 = vector.load %arg13[%c0_41, %c0_42, %c0_43] : memref<1x8x1xf32, #tpu.memory_space<vmem>>, vector<1x8x1xf32>
    %55 = vector.shape_cast %54 : vector<1x8x1xf32> to vector<8x1xf32>
    %56 = vector.shape_cast %53 : vector<8x1xf32> to vector<1x8x1xf32>
    tpu.vector_store %arg13[%c0_41, %c0_42, %c0_43], %56 {strides = array<i32>} : memref<1x8x1xf32, #tpu.memory_space<vmem>>, vector<1x8x1xf32>,
    return
  }
  func.func @transform_0(%arg0: i32, %arg1: i32) -> (i32, i32, i32) {
    %c0_i32 = arith.constant 0 : i32
    %c0_i32_0 = arith.constant 0 : i32
    return %arg0, %c0_i32, %arg1 : i32, i32, i32
  }
  func.func @transform_1(%arg0: i32, %arg1: i32) -> (i32, i32, i32) {
    %c0_i32 = arith.constant 0 : i32
    %c0_i32_0 = arith.constant 0 : i32
    return %arg0, %c0_i32, %arg1 : i32, i32, i32
  }
  func.func @transform_2(%arg0: i32, %arg1: i32) -> (i32, i32, i32) {
    %c0_i32 = arith.constant 0 : i32
    %c0_i32_0 = arith.constant 0 : i32
    return %arg0, %c0_i32, %arg1 : i32, i32, i32
  }
  func.func @transform_3(%arg0: i32, %arg1: i32) -> (i32, i32) {
    %c0_i32 = arith.constant 0 : i32
    %c0_i32_0 = arith.constant 0 : i32
    %c0_i32_1 = arith.constant 0 : i32
    return %c0_i32, %c0_i32_0 : i32, i32
  }
  func.func @transform_4(%arg0: i32, %arg1: i32) -> (i32, i32) {
    %c0_i32 = arith.constant 0 : i32
    %c0_i32_0 = arith.constant 0 : i32
    %c0_i32_1 = arith.constant 0 : i32
    return %c0_i32, %c0_i32_0 : i32, i32
  }
  func.func @transform_5(%arg0: i32, %arg1: i32) -> (i32, i32) {
    %c0_i32 = arith.constant 0 : i32
    %c0_i32_0 = arith.constant 0 : i32
    %c0_i32_1 = arith.constant 0 : i32
    return %c0_i32, %c0_i32_0 : i32, i32
  }
  func.func @transform_6(%arg0: i32, %arg1: i32) -> (i32, i32) {
    %c0_i32 = arith.constant 0 : i32
    %c0_i32_0 = arith.constant 0 : i32
    %c0_i32_1 = arith.constant 0 : i32
    return %c0_i32, %c0_i32_0 : i32, i32
  }
  func.func @transform_7(%arg0: i32, %arg1: i32) -> (i32, i32) {
    %c0_i32 = arith.constant 0 : i32
    %c0_i32_0 = arith.constant 0 : i32
    %c0_i32_1 = arith.constant 0 : i32
    return %c0_i32, %c0_i32_0 : i32, i32
  }
  func.func @transform_8(%arg0: i32, %arg1: i32) -> (i32, i32) {
    %c0_i32 = arith.constant 0 : i32
    %c0_i32_0 = arith.constant 0 : i32
    %c0_i32_1 = arith.constant 0 : i32
    return %c0_i32, %c0_i32_0 : i32, i32
  }
  func.func @transform_9(%arg0: i32, %arg1: i32) -> (i32, i32, i32) {
    %c0_i32 = arith.constant 0 : i32
    %c0_i32_0 = arith.constant 0 : i32
    return %arg0, %c0_i32, %arg1 : i32, i32, i32
  }
  func.func @transform_10(%arg0: i32, %arg1: i32) -> (i32, i32, i32) {
    %c0_i32 = arith.constant 0 : i32
    %c0_i32_0 = arith.constant 0 : i32
    %c0_i32_1 = arith.constant 0 : i32
    return %arg0, %c0_i32, %c0_i32_0 : i32, i32, i32
  }
  func.func @transform_11(%arg0: i32, %arg1: i32) -> (i32, i32, i32) {
    %c0_i32 = arith.constant 0 : i32
    %c0_i32_0 = arith.constant 0 : i32
    %c0_i32_1 = arith.constant 0 : i32
    return %arg0, %c0_i32, %c0_i32_0 : i32, i32, i32
  }
}

module attributes {stable_mosaic.version = 11 : i64} {
  func.func @_pass_b_kernel(%arg0: i32, %arg1: i32, %arg2: memref<1x8x256xf32, #tpu.memory_space<vmem>>, %arg3: memref<8x1xf32, #tpu.memory_space<vmem>>, %arg4: memref<8x1xf32, #tpu.memory_space<vmem>>, %arg5: memref<8x8xf32, #tpu.memory_space<vmem>>, %arg6: memref<1x8x256xf32, #tpu.memory_space<vmem>>) attributes {dimension_semantics = [#tpu.dimension_semantics<parallel>, #tpu.dimension_semantics<parallel>], iteration_bounds = array<i64: 2, 1>, scalar_prefetch = 0 : i64, scratch_operands = 0 : i64, tpu.core_type = #tpu.core_type<tc>, window_params = [{transform_indices = @transform_0, window_bounds = array<i64: 1, 8, 256>}, {pipeline_mode = #tpu.pipeline_mode<synchronous>, transform_indices = @transform_1, window_bounds = array<i64: 8, 1>}, {pipeline_mode = #tpu.pipeline_mode<synchronous>, transform_indices = @transform_2, window_bounds = array<i64: 8, 1>}, {pipeline_mode = #tpu.pipeline_mode<synchronous>, transform_indices = @transform_3, window_bounds = array<i64: 8, 8>}, {transform_indices = @transform_4, window_bounds = array<i64: 1, 8, 256>}]} {
    %c0 = arith.constant 0 : index
    %c0_0 = arith.constant 0 : index
    %c0_1 = arith.constant 0 : index
    %0 = vector.load %arg2[%c0, %c0_0, %c0_1] : memref<1x8x256xf32, #tpu.memory_space<vmem>>, vector<1x8x256xf32>
    %1 = vector.shape_cast %0 : vector<1x8x256xf32> to vector<8x256xf32>
    %c0_2 = arith.constant 0 : index
    %c0_3 = arith.constant 0 : index
    %2 = vector.load %arg3[%c0_2, %c0_3] : memref<8x1xf32, #tpu.memory_space<vmem>>, vector<8x1xf32>
    %3 = vector.broadcast %2 : vector<8x1xf32> to vector<8x256xf32>
    %4 = arith.mulf %1, %3 : vector<8x256xf32>
    %c0_4 = arith.constant 0 : index
    %c0_5 = arith.constant 0 : index
    %5 = vector.load %arg4[%c0_4, %c0_5] : memref<8x1xf32, #tpu.memory_space<vmem>>, vector<8x1xf32>
    %6 = vector.broadcast %5 : vector<8x1xf32> to vector<8x256xf32>
    %7 = arith.addf %4, %6 : vector<8x256xf32>
    %c0_6 = arith.constant 0 : index
    %c0_7 = arith.constant 0 : index
    %8 = vector.load %arg5[%c0_6, %c0_7] : memref<8x8xf32, #tpu.memory_space<vmem>>, vector<8x8xf32>
    %cst = arith.constant dense<0.000000e+00> : vector<8x256xf32>
    %9 = tpu.matmul %8, %7, %cst {dimension_numbers = #tpu.dot_dimension_numbers<[1], [0], [0], [1], [0, 0, 1, 1], [], []>} : vector<8x8xf32>, vector<8x256xf32>, vector<8x256xf32> -> vector<8x256xf32>
    %cst_8 = arith.constant 0.000000e+00 : f32
    %10 = vector.broadcast %cst_8 : f32 to vector<8x256xf32>
    %11 = arith.maximumf %9, %10 : vector<8x256xf32>
    %c0_9 = arith.constant 0 : index
    %c0_10 = arith.constant 0 : index
    %c0_11 = arith.constant 0 : index
    %12 = vector.load %arg6[%c0_9, %c0_10, %c0_11] : memref<1x8x256xf32, #tpu.memory_space<vmem>>, vector<1x8x256xf32>
    %13 = vector.shape_cast %12 : vector<1x8x256xf32> to vector<8x256xf32>
    %14 = vector.shape_cast %11 : vector<8x256xf32> to vector<1x8x256xf32>
    tpu.vector_store %arg6[%c0_9, %c0_10, %c0_11], %14 {strides = array<i32>} : memref<1x8x256xf32, #tpu.memory_space<vmem>>, vector<1x8x256xf32>,
    return
  }
  func.func @transform_0(%arg0: i32, %arg1: i32) -> (i32, i32, i32) {
    %c0_i32 = arith.constant 0 : i32
    %c0_i32_0 = arith.constant 0 : i32
    return %arg0, %c0_i32, %arg1 : i32, i32, i32
  }
  func.func @transform_1(%arg0: i32, %arg1: i32) -> (i32, i32) {
    %c0_i32 = arith.constant 0 : i32
    %c0_i32_0 = arith.constant 0 : i32
    %c0_i32_1 = arith.constant 0 : i32
    return %c0_i32, %c0_i32_0 : i32, i32
  }
  func.func @transform_2(%arg0: i32, %arg1: i32) -> (i32, i32) {
    %c0_i32 = arith.constant 0 : i32
    %c0_i32_0 = arith.constant 0 : i32
    %c0_i32_1 = arith.constant 0 : i32
    return %c0_i32, %c0_i32_0 : i32, i32
  }
  func.func @transform_3(%arg0: i32, %arg1: i32) -> (i32, i32) {
    %c0_i32 = arith.constant 0 : i32
    %c0_i32_0 = arith.constant 0 : i32
    %c0_i32_1 = arith.constant 0 : i32
    return %c0_i32, %c0_i32_0 : i32, i32
  }
  func.func @transform_4(%arg0: i32, %arg1: i32) -> (i32, i32, i32) {
    %c0_i32 = arith.constant 0 : i32
    %c0_i32_0 = arith.constant 0 : i32
    return %arg0, %c0_i32, %arg1 : i32, i32, i32
  }
}

</mosaic_0001>

<bundles_post_ra>
// kernel: dasi_forward.4
= control target key start
LH: loop header
LB: loop body
LE: loop exit
PB: predicated region body
PF: predicated region fallthrough
CT: control target
= control target key end

     0   :  { %s464_s12 = smov 0   ;;  %s466_s13 = smov 0   ;;  %s503_s0 = inlined_call_operand.vmem [shape: f32[2,16,64], index: 0, kind: input, shape index: {}]   ;;  %s504_s1 = inlined_call_operand.vmem [shape: f32[8,16], index: 1, kind: input, shape index: {}]   ;;  %s505_s2 = inlined_call_operand.vmem [shape: f32[8,1], index: 2, kind: input, shape index: {}]   ;;  %s506_s3 = inlined_call_operand.vmem [shape: f32[2,8,64], index: 3, kind: output, shape index: {}]  }
   0x1   :  { %s468_s14 = smov 0  }
   0x2 LB: > { %s25_s15 = sadd.s32 1, %s434_s13  ;;  %p366_p0 = scmp.ge.s32.totalorder %s438_s14, 1  ;;  %s438_s14 = sphi %s468_s14, %s13_s14   ;;  %s434_s13 = sphi %s466_s13, %s508_s13   ;;  %s430_s12 = sphi %s464_s12, %s507_s12  }
   0x3   : > { %p27_p1 = scmp.ge.s32.totalorder %s25_s15, 2  ;;  %p156_p2 = scmp.lt.s32.totalorder %s438_s14, 3 }
   0x5   : > { %s510_s15 = smov (%p27_p1, %s25_s15), 0  ;;  %p157_p3 = pnand %p366_p0, %p156_p2 }
   0x6   : > { %p185_p4 = scmp.lt.s32.totalorder (!%p157_p3), %s430_s12, 1  ;;  %v440_v0 = vmov (!%p157_p3), 0.0|0.0   ;;  %vm441_vm0 = vmmov (!%p157_p3), 0   ;;  %v442_v1 = vmov (!%p157_p3), 0.0   ;;  %v203_v2 = vld [vmem:[%s505_s2] sm:$0xff] (!%p157_p3)  ;;  %v443_v3 = vmov (!%p157_p3), 0  }
   0x7   : > { %160 = sbr.rel (%p157_p3) target bundleno = 238 (0xee), region = 32  ;;  %384 = vmatprep.subr.bf16.mxu0 (!%p157_p3), %v440_v0  ;;  %381 = vmatprep.mubr.msk.f32.mxu0 (!%p157_p3), %vm441_vm0, %v442_v1  ;;  %v200_v7 = vld [vmem:[%s504_s1] sm:$0xff] (!%p157_p3)  ;;  %vm209_vm1 = vcmask (!%p157_p3), 130048   ;;  %vm283_vm2 = vcmask (!%p157_p3), 523264  }
   0x8   : > { %415 = vset.pattern.permute.xlu0 (!%p157_p3), %v443_v3 }
   0x9   : > { %206 = vperm.xlu0 (!%p157_p3), %415, %v203_v2  }
   0xe   : > { %s512_s12 = smov (!%p185_p4, %s430_s12), 1 }
   0xf   : > { %s373_s18 = sshll.u32 %s512_s12, 4  ;;  %s369_s24 = sshll.u32 %s512_s12, 3 }
  0x10   : > { %s192_s21 = scalar_lea.vmem %s503_s0, %s373_s18  ;;  %s199_s27 = scalar_lea.vmem %s506_s3, %s369_s24 }
  0x11   : > { %v201_v4 = vld [vmem:[%s192_s21] sm:$0xff]  ;;  %v202_v5 = vld [vmem:[%s192_s21 + $0x8] sm:$0xff] }
  0x12   : > { %v385_v6 = vpack.c.bf16 %v202_v5, %v201_v4 }
  0x14   : > { %386 = vmatpush3.bf16.msra.mxu0 %v385_v6 }
  0x17   : > { %382 = vmatmul.mubr.msk.f32.vlgmr.msra.gmra.mrb[0].mxu0 %vm209_vm1, %v200_v7 }
  0x88   : > { %v207_v8 = vpop.permute.xlu0 %206 }
  0xea   : > { %v279_v9 = vpop.f32.mrb[0].mxu0 }
  0xeb   : > { %v280_v10 = vadd.f32 %v279_v9, %v207_v8  ;;  %v383_v11 = vpop.f32.mrb[1].mxu0 }
  0xed   : > { %284 = vst.msk [vmem:[%s199_s27] sm:$0xff] %vm283_vm2, %v280_v10 }
  0xee PF: > { %s13_s14 = sadd.s32 1, %s438_s14   ;;  %s507_s12 = smov %s434_s13 }
  0xef   : > { %p10_p5 = scmp.ge.s32.totalorder %s13_s14, 4   ;;  %s508_s13 = smov %s510_s15 }
  0xf1   :  { %12 = sbr.rel (!%p10_p5) target bundleno = 2 (0x2), region = 62 }

// kernel: dasi_forward.5
= control target key start
LH: loop header
LB: loop body
LE: loop exit
PB: predicated region body
PF: predicated region fallthrough
CT: control target
= control target key end

     0   :  { %s592_s12 = smov 0   ;;  %s594_s13 = smov 0   ;;  %s652_s0 = inlined_call_operand.vmem [shape: f32[2,8,8,8], index: 0, kind: input, shape index: {}]   ;;  %s653_s1 = inlined_call_operand.vmem [shape: f32[16,8], index: 1, kind: input, shape index: {}]   ;;  %s654_s2 = inlined_call_operand.vmem [shape: f32[8,16], index: 2, kind: input, shape index: {}]   ;;  %s655_s3 = inlined_call_operand.vmem [shape: f32[2,8,16,16], index: 3, kind: output, shape index: {}]  }
   0x1   :  { %s596_s14 = smov 0   ;;  %s598_s15 = smov 0  }
   0x2   :  { %s600_s16 = smov 0  }
   0x3 LB: > { %s22_s17 = sadd.s32 1, %s560_s14  ;;  %s25_s18 = sadd.s32 1, %s564_s15  ;;  %s568_s16 = sphi %s600_s16, %s13_s16   ;;  %s564_s15 = sphi %s598_s15, %s659_s15   ;;  %s560_s14 = sphi %s596_s14, %s658_s14   ;;  %s556_s13 = sphi %s594_s13, %s657_s13   ;;  %s552_s12 = sphi %s592_s12, %s656_s12  }
   0x4   : > { %p23_p0 = scmp.ge.s32.totalorder %s22_s17, 8  ;;  %p462_p1 = scmp.ge.s32.totalorder %s568_s16, 1 }
   0x5   : > { %p156_p2 = scmp.lt.s32.totalorder %s568_s16, 17 }
   0x6   : > { %s661_s17 = smov (%p23_p0, %s22_s17), 0  ;;  %s663_s18 = smov (!%p23_p0, %s25_s18), %s564_s15 }
   0x7   : > { %p157_p3 = pnand %p462_p1, %p156_p2  ;;  %p27_p4 = scmp.ge.s32.totalorder %s663_s18, 2 }
   0x8   : > { %v205_v0 = vld [vmem:[%s654_s2] sm:$0xff] (!%p157_p3)  ;;  %p187_p5 = scmp.lt.s32.totalorder (!%p157_p3), %s556_s13, 1  ;;  %p189_p6 = scmp.lt.s32.totalorder (!%p157_p3), %s552_s12, 7  ;;  %v570_v1 = vmov (!%p157_p3), 0.0   ;;  %vm571_vm0 = vmmov (!%p157_p3), 0   ;;  %vm206_vm1 = vcmask (!%p157_p3), 64512  }
   0x9   : > { %s665_s18 = smov (%p27_p4, %s663_s18), 0  ;;  %160 = sbr.rel (%p157_p3) target bundleno = 450 (0x1c2), region = 32 }
   0xa   : > { %478 = vmatprep.subr.mxu0 (!%p157_p3), %v570_v1  ;;  %480 = vmatprep.mubr.msk.f32.mxu0 (!%p157_p3), %vm571_vm0, %v570_v1  ;;  %v280_v3 = vld [vmem:[%s653_s1] sm:$0xff] (!%p157_p3)  ;;  %v281_v5 = vld [vmem:[%s653_s1 + $0x8] sm:$0xff] (!%p157_p3)  ;;  %vm363_vm2 = vcmask (!%p157_p3), 130048  }
   0xb   : > { %479 = vmatpush3.msra.mxu0 (!%p157_p3), %v205_v0  ;;  %485 = vmatprep.mubr.msk.f32.mxu1 (!%p157_p3), %vm206_vm1, %v280_v3 }
  0x10   : > { %s667_s13 = smov (!%p187_p5, %s556_s13), 1  ;;  %s669_s12 = smov (!%p189_p6, %s552_s12), 7 }
  0x11   : > { %s463_s21 = sshll.u32 %s667_s13, 3  ;;  %s465_s4 = sshll.u32 %s669_s12, 1 }
  0x12   : > { %s192_s22 = sadd.s32 %s463_s21, %s669_s12  ;;  %s466_s5 = sshll.u32 %s667_s13, 4 }
  0x13   : > { %s464_s23 = sshll.u32 %s192_s22, 3  ;;  %s201_s6 = sadd.s32 %s466_s5, %s465_s4 }
  0x14   : > { %s194_s26 = scalar_lea.vmem %s652_s0, %s464_s23  ;;  %s467_s7 = sshll.u32 %s201_s6, 3 }
  0x15   : > { %v204_v2 = vld [vmem:[%s194_s26] sm:$0xff]  ;;  %s203_s10 = scalar_lea.vmem %s655_s3, %s467_s7 }
  0x16   : > { %481 = vmatmul.mubr.msk.f32.vlgmr.msra.gmra.mrb[0].mxu0 %vm206_vm1, %v204_v2 }
  0xe9   : > { %v276_v4 = vpop.f32.mrb[0].mxu0 }
  0xea   : > { %v482_v6 = vpop.f32.mrb[1].mxu0  ;;  %483 = vmatprep.subr.mxu1 %v276_v4 }
  0xeb   : > { %484 = vmatpush3.msra.mxu1 %v276_v4 }
  0xec   : > { %486 = vmatmul.mubr.msk.f32.vlgmr.msra.gmra.mrb[0].mxu1 %vm206_vm1, %v281_v5 }
 0x1bf   : > { %v487_v7 = vpop.f32.mrb[0].mxu1 }
 0x1c0   : > { %365 = vst.msk [vmem:[%s203_s10 + $0x8] sm:$0xff] %vm363_vm2, %v487_v7  ;;  %v354_v8 = vpop.f32.mrb[1].mxu1 }
 0x1c1   : > { %364 = vst.msk [vmem:[%s203_s10] sm:$0xff] %vm363_vm2, %v354_v8 }
 0x1c2 PF: > { %s13_s16 = sadd.s32 1, %s568_s16   ;;  %s656_s12 = smov %s560_s14 }
 0x1c3   : > { %p10_p7 = scmp.ge.s32.totalorder %s13_s16, 18   ;;  %s657_s13 = smov %s564_s15 }
 0x1c4   : > { %s658_s14 = smov %s661_s17  ;;  %s659_s15 = smov %s665_s18 }
 0x1c5   :  { %12 = sbr.rel (!%p10_p7) target bundleno = 3 (0x3), region = 62 }

// kernel: dasi_forward.7
= control target key start
LH: loop header
LB: loop body
LE: loop exit
PB: predicated region body
PF: predicated region fallthrough
CT: control target
= control target key end

     0   :  { %s514_s15 = smov 0   ;;  %s516_s16 = smov 0   ;;  %s556_s0 = inlined_call_operand.vmem [shape: f32[2,8,256], index: 0, kind: input, shape index: {}]   ;;  %s557_s1 = inlined_call_operand.vmem [shape: f32[8,1], index: 1, kind: input, shape index: {}]   ;;  %s558_s2 = inlined_call_operand.vmem [shape: f32[8,1], index: 2, kind: input, shape index: {}]   ;;  %s559_s3 = inlined_call_operand.vmem [shape: f32[8,8], index: 3, kind: input, shape index: {}]   ;;  %s560_s4 = inlined_call_operand.vmem [shape: f32[2,8,256], index: 4, kind: output, shape index: {}]  }
   0x1   :  { %s518_s17 = smov 0  }
   0x2 LB: > { %s26_s18 = sadd.s32 1, %s481_s16  ;;  %p426_p0 = scmp.ge.s32.totalorder %s485_s17, 1  ;;  %s485_s17 = sphi %s518_s17, %s14_s17   ;;  %s481_s16 = sphi %s516_s16, %s562_s16   ;;  %s477_s15 = sphi %s514_s15, %s561_s15  }
   0x3   : > { %p28_p1 = scmp.ge.s32.totalorder %s26_s18, 2  ;;  %p183_p2 = scmp.lt.s32.totalorder %s485_s17, 3 }
   0x5   : > { %s564_s18 = smov (%p28_p1, %s26_s18), 0  ;;  %p184_p3 = pnand %p426_p0, %p183_p2 }
   0x6   : > { %v239_v0 = vld [vmem:[%s557_s1] sm:$0xff] (!%p184_p3)  ;;  %v487_v1 = vmov (!%p184_p3), 0   ;;  %v488_v3 = vmov (!%p184_p3), 0.0   ;;  %p218_p4 = scmp.lt.s32.totalorder (!%p184_p3), %s477_s15, 1  ;;  %vm256_vm0 = vcmask (!%p184_p3), 64512  }
   0x7   : > { %187 = sbr.rel (%p184_p3) target bundleno = 360 (0x168), region = 36  ;;  %462 = vset.pattern.permute.xlu0 (!%p184_p3), %v487_v1  ;;  %v247_v2 = vld [vmem:[%s558_s2] sm:$0xff] (!%p184_p3)  ;;  %324 = vmatprep.mubr.f32.mxu0 (!%p184_p3), %v488_v3 }
   0x8   : > { %242 = vperm.xlu0 (!%p184_p3), %462, %v239_v0   ;;  %v255_v12 = vld [vmem:[%s559_s3] sm:$0xff] (!%p184_p3) }
   0xc   : > { %250 = vperm.xlu0 (!%p184_p3), %462, %v247_v2  }
   0xe   : > { %s566_s15 = smov (!%p218_p4, %s477_s15), 1 }
   0xf   : > { %s434_s23 = sshll.u32 %s566_s15, 4 }
  0x10   : > { %s225_s26 = scalar_lea.vmem %s556_s0, %s434_s23  ;;  %s235_s5 = scalar_lea.vmem %s560_s4, %s434_s23 }
  0x11   : > { %v237_v5 = vld [vmem:[%s225_s26] sm:$0xff]  ;;  %v238_v6 = vld [vmem:[%s225_s26 + $0x8] sm:$0xff] }
  0x87   : > { %v243_v4 = vpop.permute.xlu0 %242 }
  0x88   : > { %v245_v7 = vmul.f32 %v243_v4, %v237_v5  ;;  %v246_v8 = vmul.f32 %v243_v4, %v238_v6 }
  0x8b   : > { %v251_v9 = vpop.permute.xlu0 %250 }
  0x8c   : > { %v253_v10 = vadd.f32 %v251_v9, %v245_v7  ;;  %v254_v11 = vadd.f32 %v251_v9, %v246_v8 }
  0x8e   : > { %260 = vmatprep.subr.mxu0 %v254_v11 }
  0x8f   : > { %261 = vmatpush1.msra.mxu0 %v253_v10 }
  0x90   : > { %431 = vmatmul.mubr.msk.f32.vlgmr.msra.gmra.mrb[0].mxu0 %vm256_vm0, %v255_v12 }
 0x163   : > { %v326_v13 = vpop.f32.mrb[0].mxu0 }
 0x164   : > { %v331_v14 = vmax.f32 %v326_v13, 0.0  ;;  %v328_v15 = vpop.f32.mrb[1].mxu0 }
 0x165   : > { %v332_v16 = vmax.f32 %v328_v15, 0.0 }
 0x166   : > { %333 = vst [vmem:[%s235_s5] sm:$0xff] %v331_v14 }
 0x167   : > { %334 = vst [vmem:[%s235_s5 + $0x8] sm:$0xff] %v332_v16 }
 0x168 PF: > { %s14_s17 = sadd.s32 1, %s485_s17   ;;  %s561_s15 = smov %s481_s16 }
 0x169   : > { %p11_p5 = scmp.ge.s32.totalorder %s14_s17, 4   ;;  %s562_s16 = smov %s564_s18 }
 0x16b   :  { %13 = sbr.rel (!%p11_p5) target bundleno = 2 (0x2), region = 66 }

// kernel: dasi_forward.6
= control target key start
LH: loop header
LB: loop body
LE: loop exit
PB: predicated region body
PF: predicated region fallthrough
CT: control target
= control target key end

     0   :  { %s1171_s17 = smov 0   ;;  %s1173_s18 = smov 0   ;;  %s1255_s0 = inlined_call_operand.vmem [shape: f32[2,8,256], index: 0, kind: input, shape index: {}]   ;;  %s1256_s1 = inlined_call_operand.vmem [shape: f32[2,8,256], index: 1, kind: input, shape index: {}]   ;;  %s1257_s2 = inlined_call_operand.vmem [shape: f32[2,36,256], index: 2, kind: input, shape index: {}]   ;;  %s1258_s3 = inlined_call_operand.vmem [shape: f32[8,8], index: 3, kind: input, shape index: {}]   ;;  %s1259_s4 = inlined_call_operand.vmem [shape: f32[8,1], index: 4, kind: input, shape index: {}]   ;;  %s1260_s5 = inlined_call_operand.vmem [shape: f32[8,36], index: 5, kind: input, shape index: {}]   ;;  %s1261_s6 = inlined_call_operand.vmem [shape: f32[8,1], index: 6, kind: input, shape index: {}]   ;;  %s1262_s7 = inlined_call_operand.vmem [shape: f32[8,8], index: 7, kind: input, shape index: {}]   ;;  %s1263_s8 = inlined_call_operand.vmem [shape: f32[8,1], index: 8, kind: input, shape index: {}]   ;;  %s1264_s9 = inlined_call_operand.vmem [shape: f32[2,8,256], index: 9, kind: output, shape index: {0}]   ;;  %s1265_s10 = inlined_call_operand.vmem [shape: f32[2,8,1], index: 10, kind: output, shape index: {1}]   ;;  %s1266_s11 = inlined_call_operand.vmem [shape: f32[2,8,1], index: 11, kind: output, shape index: {2}]  }
   0x1   :  { %s1175_s19 = smov 0  }
   0x2 LB: > { %s34_s20 = sadd.s32 1, %s1103_s18  ;;  %p1020_p0 = scmp.ge.s32.totalorder %s1107_s19, 1  ;;  %s1107_s19 = sphi %s1175_s19, %s22_s19   ;;  %s1103_s18 = sphi %s1173_s18, %s1268_s18   ;;  %s1099_s17 = sphi %s1171_s17, %s1267_s17  }
   0x3   : > { %p36_p1 = scmp.ge.s32.totalorder %s34_s20, 2  ;;  %p397_p2 = scmp.lt.s32.totalorder %s1107_s19, 3 }
   0x5   : > { %s1270_s20 = smov (%p36_p1, %s34_s20), 0  ;;  %p398_p3 = pnand %p1020_p0, %p397_p2 }
   0x6   : > { %p472_p4 = scmp.lt.s32.totalorder (!%p398_p3), %s1099_s17, 1  ;;  %v1109_v0 = vmov (!%p398_p3), 0.0   ;;  %v522_v1 = vld [vmem:[%s1259_s4] sm:$0xff] (!%p398_p3)  ;;  %v1110_v2 = vmov (!%p398_p3), 0   ;;  %vm528_vm0 = vcmask (!%p398_p3), 64512   ;;  %vm624_vm1 = vcmask (!%p398_p3), 1043456  }
   0x7   : > { %401 = sbr.rel (%p398_p3) target bundleno = 637 (0x27d), region = 56  ;;  %596 = vmatprep.mubr.f32.mxu0 (!%p398_p3), %v1109_v0  ;;  %695 = vmatprep.mubr.f32.mxu1 (!%p398_p3), %v1109_v0  ;;  %v614_v3 = vld [vmem:[%s1261_s6] sm:$0xff] (!%p398_p3)  ;;  %vm620_vm2 = vcmask (!%p398_p3), 293888   ;;  %vm813_vm3 = vcmask (!%p398_p3), 7168  }
   0x8   : > { %1075 = vset.pattern.permute.xlu0 (!%p398_p3), %v1110_v2  ;;  %1076 = vset.pattern.permute.xlu1 (!%p398_p3), %v1110_v2  ;;  %v519_v5 = vld [vmem:[%s1258_s3] sm:$0xff] (!%p398_p3) }
   0x9   : > { %525 = vperm.xlu0 (!%p398_p3), %1075, %v522_v1   ;;  %v603_v21 = vld [vmem:[%s1260_s5] sm:$0xff] (!%p398_p3) }
   0xa   : > { %v725_v22 = vld [vmem:[%s1263_s8] sm:$0xff] (!%p398_p3) }
   0xb   : > { %728 = vperm.xlu1 (!%p398_p3), %1076, %v725_v22   ;;  %v724_v53 = vld [vmem:[%s1262_s7] sm:$0xff] (!%p398_p3) }
   0xd   : > { %617 = vperm.xlu0 (!%p398_p3), %1075, %v614_v3  }
   0xe   : > { %s1272_s17 = smov (!%p472_p4, %s1099_s17), 1 }
   0xf   : > { %s1197_s23 = sshll.u32 %s1272_s17, 4  ;;  %s1048_s24 = smul.u32 80, %s1272_s17 }
  0x10   : > { %s479_s29 = scalar_lea.vmem %s1255_s0, %s1197_s23  ;;  %s489_s27 = scalar_lea.vmem %s1256_s1, %s1197_s23 }
  0x11   : > { %s499_s13 = scalar_lea.vmem %s1257_s2, %s1048_s24  ;;  %v521_v4 = vld [vmem:[%s479_s29 + $0x8] sm:$0xff]  ;;  %v520_v6 = vld [vmem:[%s479_s29] sm:$0xff]  ;;  %s1028_s30 = sshll.u32 %s1272_s17, 3 }
  0x12   : > { %532 = vmatprep.subr.mxu0 %v521_v4  ;;  %v605_v7 = vld [vmem:[%s499_s13 + $0x8] sm:$0xff]  ;;  %v607_v8 = vld [vmem:[%s499_s13 + $0x18] sm:$0xff]  ;;  %v604_v10 = vld [vmem:[%s499_s13] sm:$0xff]  ;;  %s514_s14 = scalar_lea.vmem %s1265_s10, %s1028_s30  ;;  %s509_s21 = scalar_lea.vmem %s1264_s9, %s1197_s23 }
  0x13   : > { %533 = vmatpush1.msra.mxu0 %v520_v6  ;;  %v1040_v9 = vpack.c.bf16 %v607_v8, %v605_v7  ;;  %v606_v11 = vld [vmem:[%s499_s13 + $0x10] sm:$0xff]  ;;  %v609_v12 = vld [vmem:[%s499_s13 + $0x28] sm:$0xff]  ;;  %v611_v14 = vld [vmem:[%s499_s13 + $0x38] sm:$0xff]  ;;  %814 = vst.msk [vmem:[%s514_s14] sm:$0xff] %vm813_vm3, %v1109_v0  ;;  %s518_s24 = scalar_lea.vmem %s1266_s11, %s1028_s30 }
  0x14   : > { %1030 = vmatmul.mubr.msk.f32.vlgmr.msra.gmra.mrb[0].mxu0 %vm528_vm0, %v519_v5  ;;  %v1042_v13 = vpack.c.bf16 %v606_v11, %v604_v10  ;;  %v608_v15 = vld [vmem:[%s499_s13 + $0x20] sm:$0xff]  ;;  %v610_v16 = vld [vmem:[%s499_s13 + $0x30] sm:$0xff]  ;;  %v1044_v17 = vpack.c.bf16 %v611_v14, %v609_v12  ;;  %v613_v19 = vld [vmem:[%s499_s13 + $0x48] sm:$0xf]  ;;  %815 = vst.msk [vmem:[%s518_s24] sm:$0xff] %vm813_vm3, %v1109_v0 }
  0x15   : > { %1041 = vmatprep.subr.bf16.mxu1 %v1040_v9  ;;  %798 = vmatprep.mubr.f32.mxu0 %v1109_v0  ;;  %v1046_v18 = vpack.c.bf16 %v610_v16, %v608_v15  ;;  %v612_v20 = vld [vmem:[%s499_s13 + $0x40] sm:$0xf]  ;;  %v715_v42 = vld [vmem:[%s489_s27 + $0x8] sm:$0xff] }
  0x16   : > { %1043 = vmatpush1.bf16.msra.mxu1 %v1042_v13  ;;  %v714_v39 = vld [vmem:[%s489_s27] sm:$0xff] }
  0x17   : > { %1045 = vmatprep.subr.bf16.mxu1 %v1044_v17 }
  0x1a   : > { %1047 = vmatpush1.bf16.msra.mxu1 %v1046_v18  ;;  %v816_v2 = vld [vmem:[%s514_s14] sm:$0xff] }
  0x1b   : > { %1031 = vmatprep.subr.msk.mxu1 %vm624_vm1, %v613_v19  ;;  %v823_v4 = vld [vmem:[%s518_s24] sm:$0xff] }
  0x1e   : > { %1032 = vmatpush1.msk.msra.mxu1 %vm624_vm1, %v612_v20 }
  0x1f   : > { %1033 = vmatmul.mubr.msk.f32.vlgmr.msra.gmra.mrb[0].mxu1 %vm620_vm2, %v603_v21 }
  0x88   : > { %v526_v23 = vpop.permute.xlu0 %525 }
  0x8a   : > { %v729_v54 = vpop.permute.xlu1 %728 }
  0x8c   : > { %v618_v40 = vpop.permute.xlu0 %617 }
  0xe7   : > { %v598_v24 = vpop.f32.mrb[0].mxu0 }
  0xe8   : > { %v599_v25 = vadd.f32 %v598_v24, %v526_v23  ;;  %v600_v26 = vpop.f32.mrb[1].mxu0 }
  0xe9   : > { %v601_v27 = vadd.f32 %v600_v26, %v526_v23 }
  0xea   : > { %v702_v28 = vsub.f32 0.0, %v599_v25 }
  0xeb   : > { %v703_v29 = vsub.f32 0.0, %v601_v27 }
  0xec   : > { %v704_v30 = vmul.f32 1.442695, %v702_v28 }
  0xed   : > { %v706_v31 = vmul.f32 1.442695, %v703_v29 }
  0xee   : > { %1077 = vpow2.f32 %v704_v30 }
  0xef   : > { %1079 = vpow2.f32 %v706_v31 }
  0xf2   : > { %v697_v32 = vpop.f32.mrb[0].mxu1 }
  0xf3   : > { %v699_v33 = vpop.f32.mrb[1].mxu1  ;;  %v698_v43 = vadd.f32 %v697_v32, %v618_v40 }
  0xf4   : > { %v700_v45 = vadd.f32 %v699_v33, %v618_v40 }
  0xf8   : > { %v1078_v34 = vpop.eup %1077 }
  0xf9   : > { %v1080_v35 = vpop.eup %1079  ;;  %v708_v36 = vadd.f32 1.0, %v1078_v34 }
  0xfa   : > { %v709_v37 = vadd.f32 1.0, %v1080_v35 }
  0xfb   : > { %1081 = vrcp.f32 %v708_v36 }
  0xfc   : > { %1083 = vrcp.f32 %v709_v37 }
 0x105   : > { %v1082_v38 = vpop.eup %1081 }
 0x106   : > { %v1084_v41 = vpop.eup %1083  ;;  %v718_v44 = vsub.f32 1.0, %v1082_v38  ;;  %v716_v47 = vmul.f32 %v1082_v38, %v714_v39 }
 0x107   : > { %v719_v46 = vsub.f32 1.0, %v1084_v41  ;;  %v717_v50 = vmul.f32 %v1084_v41, %v715_v42 }
 0x108   : > { %v720_v48 = vmul.f32 %v718_v44, %v698_v43 }
 0x109   : > { %v721_v49 = vmul.f32 %v719_v46, %v700_v45 }
 0x10a   : > { %v722_v51 = vadd.f32 %v720_v48, %v716_v47 }
 0x10b   : > { %v723_v52 = vadd.f32 %v721_v49, %v717_v50 }
 0x10d   : > { %734 = vmatprep.subr.mxu0 %v723_v52 }
 0x10e   : > { %735 = vmatpush1.msra.mxu0 %v722_v51 }
 0x10f   : > { %1034 = vmatmul.mubr.msk.f32.vlgmr.msra.gmra.mrb[2].mxu0 %vm528_vm0, %v724_v53 }
 0x1e2   : > { %v800_v55 = vpop.f32.mrb[2].mxu0 }
 0x1e3   : > { %v801_v56 = vadd.f32 %v800_v55, %v729_v54  ;;  %v802_v57 = vpop.f32.mrb[3].mxu0 }
 0x1e4   : > { %v803_v58 = vadd.f32 %v802_v57, %v729_v54 }
 0x1e5   : > { %v805_v59 = vadd.f32 %v801_v56, %v599_v25 }
 0x1e6   : > { %v806_v60 = vadd.f32 %v803_v58, %v601_v27 }
 0x1e7   : > { %807 = vst [vmem:[%s509_s21] sm:$0xff] %v805_v59  ;;  %v824_v61 = vmul.f32 %v805_v59, %v805_v59 }
 0x1e8   : > { %808 = vst [vmem:[%s509_s21 + $0x8] sm:$0xff] %v806_v60  ;;  %v817_v62 = vadd.f32 %v806_v60, %v805_v59  ;;  %v825_v63 = vmul.f32 %v806_v60, %v806_v60 }
 0x1ea   : > { %818 = vadd.xlane.f32.xlu1 %v817_v62  ;;  %v826_v1 = vadd.f32 %v825_v63, %v824_v61 }
 0x1ec   : > { %827 = vadd.xlane.f32.xlu0 %v826_v1 }
 0x277   : > { %v819_v3 = vpop.xlane.xlu1 %818 }
 0x278   : > { %v820_v5 = vadd.f32 %v819_v3, %v816_v2 }
 0x279   : > { %v828_v6 = vpop.xlane.xlu0 %827 }
 0x27a   : > { %822 = vst.msk [vmem:[%s514_s14] sm:$0xff] %vm813_vm3, %v820_v5  ;;  %v829_v7 = vadd.f32 %v828_v6, %v823_v4 }
 0x27c   : > { %830 = vst.msk [vmem:[%s518_s24] sm:$0xff] %vm813_vm3, %v829_v7 }
 0x27d PF: > { %s22_s19 = sadd.s32 1, %s1107_s19   ;;  %s1267_s17 = smov %s1103_s18 }
 0x27e   : > { %p19_p5 = scmp.ge.s32.totalorder %s22_s19, 4   ;;  %s1268_s18 = smov %s1270_s20 }
 0x280   :  { %21 = sbr.rel (!%p19_p5) target bundleno = 2 (0x2), region = 120 }

</bundles_post_ra>
